<compile_context>
chip_gen: v7x
topology: tpu7x:2x2x1
jax: 0.10.0
libtpu: 0.0.40
codegen_flags: <defaults>
</compile_context>

<pallas_src>
import numpy as np
import jax
import jax.numpy as jnp
from jax import lax
from jax.experimental import pallas as pl
from jax.experimental.pallas import tpu as pltpu


def _make_prompt_kernel(use_dynamic_ctx_store):
    def kernel(name_lens_ref, prefix_ref, ctx_ref, suffix_ref, out_ref, frame_ref):
        i = pl.program_id(0)
        B, seq_len, ctx_dim = out_ref.shape
        n_ctx = ctx_ref.shape[0]
        suffix_len = suffix_ref.shape[1]

        # Hoisted, class-independent values (JAX does not CSE broadcasts in loops).
        row = lax.broadcasted_iota(jnp.int32, (seq_len, 1), 0)   # output row index
        ctx_rows = ctx_ref[...].astype(out_ref.dtype)            # (n_ctx, ctx_dim)
        if not use_dynamic_ctx_store:
            ctx_bcast = [jnp.broadcast_to(ctx_rows[t:t + 1, :], (seq_len, ctx_dim))
                         for t in range(n_ctx)]

        def assemble(b, carry):
            name_len = name_lens_ref[i * B + b]                  # scalar from SMEM

            # Stage this class's prefix + suffix rows once at static offsets:
            #   frame[n_ctx]         = prefix   (row 0 of the "name" view)
            #   frame[n_ctx + 1 + s] = suffix[s]
            frame_ref[b, n_ctx:n_ctx + 1, :] = prefix_ref[b]
            frame_ref[b, n_ctx + 1:n_ctx + 1 + suffix_len, :] = suffix_ref[b]

            # Two static, row-aligned views of the frame:
            #   f_name[j] = frame[n_ctx + j] -> prefix (j=0), suffix[j-1] (j>=1)
            #   f_tail[j] = frame[j]         -> suffix[j-1-n_ctx] for the tail rows
            f_name = frame_ref[b, n_ctx:n_ctx + seq_len, :]
            f_tail = frame_ref[b, 0:seq_len, :]

            # Rows: 0 prefix | 1..name_len class name | next n_ctx ctx | rest tail.
            out = jnp.where(row <= name_len, f_name, f_tail)
            if use_dynamic_ctx_store:
                out_ref[b] = out
                # Single dynamic-start store of the learned-context rows; it also
                # overwrites the (transient) garbage the select put in those rows.
                out_ref[b, pl.ds(name_len + 1, n_ctx), :] = ctx_rows
            else:
                # Sub-32-bit dtypes: keep per-row selects (no masked RMW stores).
                for t in range(n_ctx):
                    out = jnp.where(row == name_len + 1 + t, ctx_bcast[t], out)
                out_ref[b] = out
            return carry

        # Cap the unroll so big class blocks don't blow up code size / vreg pressure.
        lax.fori_loop(0, B, assemble, 0, unroll=min(B, 8))

    return kernel


def prompt_learner2_forward(ctx, token_prefix, token_suffix, name_lens,
                            *, block_classes=None):
    """Pallas implementation of PromptLearner2.forward (position='front').

    ctx:          (n_ctx, ctx_dim)             learned generic context
    token_prefix: (n_cls, 1, ctx_dim)          SOS embedding per class
    token_suffix: (n_cls, suffix_len, ctx_dim) class-name + EOS/pad embeddings
    name_lens:    (n_cls,) int                 class-name token count (<= suffix_len)

    Returns (None, prompts), prompts: (n_cls, 1 + n_ctx + suffix_len, ctx_dim).
    """
    n_cls, _, ctx_dim = token_prefix.shape
    n_ctx = ctx.shape[0]
    suffix_len = token_suffix.shape[1]
    seq_len = 1 + n_ctx + suffix_len
    dtype = token_prefix.dtype
    itemsize = jnp.dtype(dtype).itemsize

    per_class_block_bytes = (1 + suffix_len + seq_len) * ctx_dim * itemsize
    per_class_vmem_bytes = (2 * per_class_block_bytes
                            + (seq_len + n_ctx) * ctx_dim * itemsize)

    if block_classes is None:
        # ~2 MiB of HBM traffic per grid step amortizes the fixed per-step overhead.
        B = max(1, (2 << 20) // max(per_class_block_bytes, 1))
        # Conservative VMEM budget (v7x has only 64 MiB per TensorCore).
        B = min(B, max(1, (40 << 20) // max(per_class_vmem_bytes, 1)))
        if n_cls >= 2:
            B = min(B, pl.cdiv(n_cls, 2))   # keep >= 2 grid steps for the parallel axis
        B = max(1, min(B, n_cls))
    else:
        B = max(1, min(block_classes, n_cls))

    n_grid = pl.cdiv(n_cls, B)

    # Pad only the tiny scalar table so in-kernel SMEM reads stay in bounds; the big
    # tensors rely on Pallas' partial-last-block handling (reads padded, writes clipped).
    name_lens_i32 = jnp.asarray(name_lens, dtype=jnp.int32)
    padded = n_grid * B
    if padded != n_cls:
        name_lens_i32 = jnp.pad(name_lens_i32, (0, padded - n_cls))

    # >=32-bit dtypes: single dynamic ctx-row store.  Narrower dtypes fall back to
    # selects (dynamic sublane starts on packed rows would force masked RMW stores).
    use_dynamic_ctx_store = itemsize >= 4

    vmem_need = B * per_class_vmem_bytes + 2 * n_ctx * ctx_dim * itemsize
    vmem_limit_bytes = int(min(max(vmem_need + (4 << 20), 32 << 20), 48 << 20))

    bytes_accessed = int(
        (n_cls * (1 + suffix_len + seq_len) * ctx_dim + n_ctx * ctx_dim) * itemsize)

    grid_spec = pltpu.PrefetchScalarGridSpec(
        num_scalar_prefetch=1,
        grid=(n_grid,),
        in_specs=[
            pl.BlockSpec((B, 1, ctx_dim), lambda i, nl: (i, 0, 0)),           # prefix
            pl.BlockSpec((n_ctx, ctx_dim), lambda i, nl: (0, 0)),             # ctx (shared)
            pl.BlockSpec((B, suffix_len, ctx_dim), lambda i, nl: (i, 0, 0)),  # suffix
        ],
        out_specs=pl.BlockSpec((B, seq_len, ctx_dim), lambda i, nl: (i, 0, 0)),
        scratch_shapes=[pltpu.VMEM((B, seq_len + n_ctx, ctx_dim), dtype)],    # per-class frames
    )

    prompts = pl.pallas_call(
        _make_prompt_kernel(use_dynamic_ctx_store),
        out_shape=jax.ShapeDtypeStruct((n_cls, seq_len, ctx_dim), dtype),
        grid_spec=grid_spec,
        compiler_params=pltpu.CompilerParams(
            dimension_semantics=("parallel",),   # independent classes: shard across TCs (v7x)
            vmem_limit_bytes=vmem_limit_bytes,
        ),
        cost_estimate=pl.CostEstimate(
            flops=0, transcendentals=0, bytes_accessed=bytes_accessed),
    )(name_lens_i32, token_prefix, ctx, token_suffix)

    return None, prompts


def _reference_forward(ctx, token_prefix, token_suffix, name_lens):
    """Pure-numpy reference mirroring the PyTorch 'front' branch."""
    ctx = np.asarray(ctx)
    prefix = np.asarray(token_prefix)
    suffix = np.asarray(token_suffix)
    n_cls = prefix.shape[0]
    ctx_e = np.broadcast_to(ctx[None], (n_cls,) + ctx.shape)
    prompts = []
    for i in range(n_cls):
        nl = int(name_lens[i])
        prompts.append(
            np.concatenate(
                [prefix[i], suffix[i, :nl], ctx_e[i], suffix[i, nl:]], axis=0))
    return np.stack(prompts, axis=0)


if __name__ == "__main__":
    key = jax.random.PRNGKey(0)
    k_ctx, k_pre, k_suf = jax.random.split(key, 3)

    # Small module-consistent shapes: n_ctx=1 context token, lane-dense ctx_dim=128,
    # suffix_len=6 -> seq_len=8 total tokens per prompt.
    n_ctx, ctx_dim, suffix_len = 1, 128, 6

    # nn.init.normal_(ctx_vectors, std=0.02)
    ctx = (0.02 * jax.random.normal(k_ctx, (n_ctx, ctx_dim))).astype(jnp.float32)

    # Case 1: n_cls divisible by the auto block size (8 classes -> 2 steps of 4).
    n_cls = 8
    token_prefix = jax.random.normal(k_pre, (n_cls, 1, ctx_dim), dtype=jnp.float32)
    token_suffix = jax.random.normal(k_suf, (n_cls, suffix_len, ctx_dim), dtype=jnp.float32)
    name_lens = jnp.array([1, 2, 3, 6, 0, 4, 5, 2], dtype=jnp.int32)

    _, prompts = prompt_learner2_forward(ctx, token_prefix, token_suffix, name_lens)
    prompts = jax.block_until_ready(prompts)
    ref = _reference_forward(ctx, token_prefix, token_suffix, np.asarray(name_lens))
    np.testing.assert_allclose(np.asarray(prompts), ref, rtol=1e-6, atol=1e-6)

    # Case 2: partial last class block (n_cls=10 with block_classes=4 -> blocks 4,4,2).
    n_cls2 = 10
    k_pre2, k_suf2 = jax.random.split(jax.random.PRNGKey(1), 2)
    token_prefix2 = jax.random.normal(k_pre2, (n_cls2, 1, ctx_dim), dtype=jnp.float32)
    token_suffix2 = jax.random.normal(k_suf2, (n_cls2, suffix_len, ctx_dim), dtype=jnp.float32)
    name_lens2 = jnp.array([1, 2, 3, 6, 0, 4, 5, 2, 3, 1], dtype=jnp.int32)

    _, prompts2 = prompt_learner2_forward(
        ctx, token_prefix2, token_suffix2, name_lens2, block_classes=4)
    prompts2 = jax.block_until_ready(prompts2)
    ref2 = _reference_forward(ctx, token_prefix2, token_suffix2, np.asarray(name_lens2))
    np.testing.assert_allclose(np.asarray(prompts2), ref2, rtol=1e-6, atol=1e-6)

    print("KERNEL_OK")
</pallas_src>

<mosaic_0001>
module attributes {stable_mosaic.version = 11 : i64} {
  func.func @kernel(%arg0: i32, %arg1: memref<8xi32, #tpu.memory_space<smem>>, %arg2: memref<4x1x128xf32, #tpu.memory_space<vmem>>, %arg3: memref<1x128xf32, #tpu.memory_space<vmem>>, %arg4: memref<4x6x128xf32, #tpu.memory_space<vmem>>, %arg5: memref<4x8x128xf32, #tpu.memory_space<vmem>>, %arg6: memref<4x9x128xf32, #tpu.memory_space<vmem>>) attributes {dimension_semantics = [#tpu.dimension_semantics<parallel>], iteration_bounds = array<i64: 2>, scalar_prefetch = 1 : i64, scratch_operands = 1 : i64, tpu.core_type = #tpu.core_type<tc>, window_params = [{transform_indices = @transform_0, window_bounds = array<i64: 4, 1, 128>}, {pipeline_mode = #tpu.pipeline_mode<synchronous>, transform_indices = @transform_1, window_bounds = array<i64: 1, 128>}, {transform_indices = @transform_2, window_bounds = array<i64: 4, 6, 128>}, {transform_indices = @transform_3, window_bounds = array<i64: 4, 8, 128>}]} {
    %0 = tpu.iota {dimensions = array<i32: 0>} : vector<8x1xi32>
    %c0 = arith.constant 0 : index
    %c0_0 = arith.constant 0 : index
    %1 = vector.load %arg3[%c0, %c0_0] : memref<1x128xf32, #tpu.memory_space<vmem>>, vector<1x128xf32>
    %c0_i32 = arith.constant 0 : i32
    %c4_i32 = arith.constant 4 : i32
    %2 = arith.muli %arg0, %c4_i32 : i32
    %3 = arith.addi %2, %c0_i32 : i32
    %4 = arith.index_cast %3 : i32 to index
    %5 = memref.load %arg1[%4] : memref<8xi32, #tpu.memory_space<smem>>
    %6 = arith.index_cast %c0_i32 : i32 to index
    %c0_1 = arith.constant 0 : index
    %c0_2 = arith.constant 0 : index
    %7 = vector.load %arg2[%6, %c0_1, %c0_2] : memref<4x1x128xf32, #tpu.memory_space<vmem>>, vector<1x1x128xf32>
    %8 = vector.shape_cast %7 : vector<1x1x128xf32> to vector<1x128xf32>
    %9 = arith.index_cast %c0_i32 : i32 to index
    %c1 = arith.constant 1 : index
    %c0_3 = arith.constant 0 : index
    %10 = vector.load %arg6[%9, %c1, %c0_3] : memref<4x9x128xf32, #tpu.memory_space<vmem>>, vector<1x1x128xf32>
    %11 = vector.shape_cast %10 : vector<1x1x128xf32> to vector<1x128xf32>
    %12 = vector.shape_cast %8 : vector<1x128xf32> to vector<1x1x128xf32>
    tpu.vector_store %arg6[%9, %c1, %c0_3], %12 {strides = array<i32>} : memref<4x9x128xf32, #tpu.memory_space<vmem>>, vector<1x1x128xf32>,
    %13 = arith.index_cast %c0_i32 : i32 to index
    %c0_4 = arith.constant 0 : index
    %c0_5 = arith.constant 0 : index
    %14 = vector.load %arg4[%13, %c0_4, %c0_5] : memref<4x6x128xf32, #tpu.memory_space<vmem>>, vector<1x6x128xf32>
    %15 = vector.shape_cast %14 : vector<1x6x128xf32> to vector<6x128xf32>
    %16 = arith.index_cast %c0_i32 : i32 to index
    %c2 = arith.constant 2 : index
    %c0_6 = arith.constant 0 : index
    %17 = vector.load %arg6[%16, %c2, %c0_6] : memref<4x9x128xf32, #tpu.memory_space<vmem>>, vector<1x6x128xf32>
    %18 = vector.shape_cast %17 : vector<1x6x128xf32> to vector<6x128xf32>
    %19 = vector.shape_cast %15 : vector<6x128xf32> to vector<1x6x128xf32>
    tpu.vector_store %arg6[%16, %c2, %c0_6], %19 {strides = array<i32>} : memref<4x9x128xf32, #tpu.memory_space<vmem>>, vector<1x6x128xf32>,
    %20 = arith.index_cast %c0_i32 : i32 to index
    %c1_7 = arith.constant 1 : index
    %c0_8 = arith.constant 0 : index
    %21 = vector.load %arg6[%20, %c1_7, %c0_8] : memref<4x9x128xf32, #tpu.memory_space<vmem>>, vector<1x8x128xf32>
    %22 = vector.shape_cast %21 : vector<1x8x128xf32> to vector<8x128xf32>
    %23 = arith.index_cast %c0_i32 : i32 to index
    %c0_9 = arith.constant 0 : index
    %c0_10 = arith.constant 0 : index
    %24 = vector.load %arg6[%23, %c0_9, %c0_10] : memref<4x9x128xf32, #tpu.memory_space<vmem>>, vector<1x8x128xf32>
    %25 = vector.shape_cast %24 : vector<1x8x128xf32> to vector<8x128xf32>
    %26 = vector.broadcast %5 : i32 to vector<8x1xi32>
    %27 = arith.cmpi sle, %0, %26 : vector<8x1xi32>
    %28 = vector.shape_cast %27 : vector<8x1xi1> to vector<8x1xi1>
    %29 = vector.broadcast %28 : vector<8x1xi1> to vector<8x128xi1>
    %30 = arith.select %29, %22, %25 : vector<8x128xi1>, vector<8x128xf32>
    %31 = arith.index_cast %c0_i32 : i32 to index
    %c0_11 = arith.constant 0 : index
    %c0_12 = arith.constant 0 : index
    %32 = vector.load %arg5[%31, %c0_11, %c0_12] : memref<4x8x128xf32, #tpu.memory_space<vmem>>, vector<1x8x128xf32>
    %33 = vector.shape_cast %32 : vector<1x8x128xf32> to vector<8x128xf32>
    %34 = vector.shape_cast %30 : vector<8x128xf32> to vector<1x8x128xf32>
    tpu.vector_store %arg5[%31, %c0_11, %c0_12], %34 {strides = array<i32>} : memref<4x8x128xf32, #tpu.memory_space<vmem>>, vector<1x8x128xf32>,
    %c1_i32 = arith.constant 1 : i32
    %35 = arith.addi %5, %c1_i32 : i32
    %36 = arith.index_cast %c0_i32 : i32 to index
    %37 = arith.index_cast %35 : i32 to index
    %c0_13 = arith.constant 0 : index
    %38 = vector.load %arg5[%36, %37, %c0_13] : memref<4x8x128xf32, #tpu.memory_space<vmem>>, vector<1x1x128xf32>
    %39 = vector.shape_cast %38 : vector<1x1x128xf32> to vector<1x128xf32>
    %40 = vector.shape_cast %1 : vector<1x128xf32> to vector<1x1x128xf32>
    tpu.vector_store %arg5[%36, %37, %c0_13], %40 {strides = array<i32>} : memref<4x8x128xf32, #tpu.memory_space<vmem>>, vector<1x1x128xf32>,
    %c1_i32_14 = arith.constant 1 : i32
    %c4_i32_15 = arith.constant 4 : i32
    %41 = arith.muli %arg0, %c4_i32_15 : i32
    %42 = arith.addi %41, %c1_i32_14 : i32
    %43 = arith.index_cast %42 : i32 to index
    %44 = memref.load %arg1[%43] : memref<8xi32, #tpu.memory_space<smem>>
    %45 = arith.index_cast %c1_i32_14 : i32 to index
    %c0_16 = arith.constant 0 : index
    %c0_17 = arith.constant 0 : index
    %46 = vector.load %arg2[%45, %c0_16, %c0_17] : memref<4x1x128xf32, #tpu.memory_space<vmem>>, vector<1x1x128xf32>
    %47 = vector.shape_cast %46 : vector<1x1x128xf32> to vector<1x128xf32>
    %48 = arith.index_cast %c1_i32_14 : i32 to index
    %c1_18 = arith.constant 1 : index
    %c0_19 = arith.constant 0 : index
    %49 = vector.load %arg6[%48, %c1_18, %c0_19] : memref<4x9x128xf32, #tpu.memory_space<vmem>>, vector<1x1x128xf32>
    %50 = vector.shape_cast %49 : vector<1x1x128xf32> to vector<1x128xf32>
    %51 = vector.shape_cast %47 : vector<1x128xf32> to vector<1x1x128xf32>
    tpu.vector_store %arg6[%48, %c1_18, %c0_19], %51 {strides = array<i32>} : memref<4x9x128xf32, #tpu.memory_space<vmem>>, vector<1x1x128xf32>,
    %52 = arith.index_cast %c1_i32_14 : i32 to index
    %c0_20 = arith.constant 0 : index
    %c0_21 = arith.constant 0 : index
    %53 = vector.load %arg4[%52, %c0_20, %c0_21] : memref<4x6x128xf32, #tpu.memory_space<vmem>>, vector<1x6x128xf32>
    %54 = vector.shape_cast %53 : vector<1x6x128xf32> to vector<6x128xf32>
    %55 = arith.index_cast %c1_i32_14 : i32 to index
    %c2_22 = arith.constant 2 : index
    %c0_23 = arith.constant 0 : index
    %56 = vector.load %arg6[%55, %c2_22, %c0_23] : memref<4x9x128xf32, #tpu.memory_space<vmem>>, vector<1x6x128xf32>
    %57 = vector.shape_cast %56 : vector<1x6x128xf32> to vector<6x128xf32>
    %58 = vector.shape_cast %54 : vector<6x128xf32> to vector<1x6x128xf32>
    tpu.vector_store %arg6[%55, %c2_22, %c0_23], %58 {strides = array<i32>} : memref<4x9x128xf32, #tpu.memory_space<vmem>>, vector<1x6x128xf32>,
    %59 = arith.index_cast %c1_i32_14 : i32 to index
    %c1_24 = arith.constant 1 : index
    %c0_25 = arith.constant 0 : index
    %60 = vector.load %arg6[%59, %c1_24, %c0_25] : memref<4x9x128xf32, #tpu.memory_space<vmem>>, vector<1x8x128xf32>
    %61 = vector.shape_cast %60 : vector<1x8x128xf32> to vector<8x128xf32>
    %62 = arith.index_cast %c1_i32_14 : i32 to index
    %c0_26 = arith.constant 0 : index
    %c0_27 = arith.constant 0 : index
    %63 = vector.load %arg6[%62, %c0_26, %c0_27] : memref<4x9x128xf32, #tpu.memory_space<vmem>>, vector<1x8x128xf32>
    %64 = vector.shape_cast %63 : vector<1x8x128xf32> to vector<8x128xf32>
    %65 = vector.broadcast %44 : i32 to vector<8x1xi32>
    %66 = arith.cmpi sle, %0, %65 : vector<8x1xi32>
    %67 = vector.shape_cast %66 : vector<8x1xi1> to vector<8x1xi1>
    %68 = vector.broadcast %67 : vector<8x1xi1> to vector<8x128xi1>
    %69 = arith.select %68, %61, %64 : vector<8x128xi1>, vector<8x128xf32>
    %70 = arith.index_cast %c1_i32_14 : i32 to index
    %c0_28 = arith.constant 0 : index
    %c0_29 = arith.constant 0 : index
    %71 = vector.load %arg5[%70, %c0_28, %c0_29] : memref<4x8x128xf32, #tpu.memory_space<vmem>>, vector<1x8x128xf32>
    %72 = vector.shape_cast %71 : vector<1x8x128xf32> to vector<8x128xf32>
    %73 = vector.shape_cast %69 : vector<8x128xf32> to vector<1x8x128xf32>
    tpu.vector_store %arg5[%70, %c0_28, %c0_29], %73 {strides = array<i32>} : memref<4x8x128xf32, #tpu.memory_space<vmem>>, vector<1x8x128xf32>,
    %c1_i32_30 = arith.constant 1 : i32
    %74 = arith.addi %44, %c1_i32_30 : i32
    %75 = arith.index_cast %c1_i32_14 : i32 to index
    %76 = arith.index_cast %74 : i32 to index
    %c0_31 = arith.constant 0 : index
    %77 = vector.load %arg5[%75, %76, %c0_31] : memref<4x8x128xf32, #tpu.memory_space<vmem>>, vector<1x1x128xf32>
    %78 = vector.shape_cast %77 : vector<1x1x128xf32> to vector<1x128xf32>
    %79 = vector.shape_cast %1 : vector<1x128xf32> to vector<1x1x128xf32>
    tpu.vector_store %arg5[%75, %76, %c0_31], %79 {strides = array<i32>} : memref<4x8x128xf32, #tpu.memory_space<vmem>>, vector<1x1x128xf32>,
    %c2_i32 = arith.constant 2 : i32
    %c4_i32_32 = arith.constant 4 : i32
    %80 = arith.muli %arg0, %c4_i32_32 : i32
    %81 = arith.addi %80, %c2_i32 : i32
    %82 = arith.index_cast %81 : i32 to index
    %83 = memref.load %arg1[%82] : memref<8xi32, #tpu.memory_space<smem>>
    %84 = arith.index_cast %c2_i32 : i32 to index
    %c0_33 = arith.constant 0 : index
    %c0_34 = arith.constant 0 : index
    %85 = vector.load %arg2[%84, %c0_33, %c0_34] : memref<4x1x128xf32, #tpu.memory_space<vmem>>, vector<1x1x128xf32>
    %86 = vector.shape_cast %85 : vector<1x1x128xf32> to vector<1x128xf32>
    %87 = arith.index_cast %c2_i32 : i32 to index
    %c1_35 = arith.constant 1 : index
    %c0_36 = arith.constant 0 : index
    %88 = vector.load %arg6[%87, %c1_35, %c0_36] : memref<4x9x128xf32, #tpu.memory_space<vmem>>, vector<1x1x128xf32>
    %89 = vector.shape_cast %88 : vector<1x1x128xf32> to vector<1x128xf32>
    %90 = vector.shape_cast %86 : vector<1x128xf32> to vector<1x1x128xf32>
    tpu.vector_store %arg6[%87, %c1_35, %c0_36], %90 {strides = array<i32>} : memref<4x9x128xf32, #tpu.memory_space<vmem>>, vector<1x1x128xf32>,
    %91 = arith.index_cast %c2_i32 : i32 to index
    %c0_37 = arith.constant 0 : index
    %c0_38 = arith.constant 0 : index
    %92 = vector.load %arg4[%91, %c0_37, %c0_38] : memref<4x6x128xf32, #tpu.memory_space<vmem>>, vector<1x6x128xf32>
    %93 = vector.shape_cast %92 : vector<1x6x128xf32> to vector<6x128xf32>
    %94 = arith.index_cast %c2_i32 : i32 to index
    %c2_39 = arith.constant 2 : index
    %c0_40 = arith.constant 0 : index
    %95 = vector.load %arg6[%94, %c2_39, %c0_40] : memref<4x9x128xf32, #tpu.memory_space<vmem>>, vector<1x6x128xf32>
    %96 = vector.shape_cast %95 : vector<1x6x128xf32> to vector<6x128xf32>
    %97 = vector.shape_cast %93 : vector<6x128xf32> to vector<1x6x128xf32>
    tpu.vector_store %arg6[%94, %c2_39, %c0_40], %97 {strides = array<i32>} : memref<4x9x128xf32, #tpu.memory_space<vmem>>, vector<1x6x128xf32>,
    %98 = arith.index_cast %c2_i32 : i32 to index
    %c1_41 = arith.constant 1 : index
    %c0_42 = arith.constant 0 : index
    %99 = vector.load %arg6[%98, %c1_41, %c0_42] : memref<4x9x128xf32, #tpu.memory_space<vmem>>, vector<1x8x128xf32>
    %100 = vector.shape_cast %99 : vector<1x8x128xf32> to vector<8x128xf32>
    %101 = arith.index_cast %c2_i32 : i32 to index
    %c0_43 = arith.constant 0 : index
    %c0_44 = arith.constant 0 : index
    %102 = vector.load %arg6[%101, %c0_43, %c0_44] : memref<4x9x128xf32, #tpu.memory_space<vmem>>, vector<1x8x128xf32>
    %103 = vector.shape_cast %102 : vector<1x8x128xf32> to vector<8x128xf32>
    %104 = vector.broadcast %83 : i32 to vector<8x1xi32>
    %105 = arith.cmpi sle, %0, %104 : vector<8x1xi32>
    %106 = vector.shape_cast %105 : vector<8x1xi1> to vector<8x1xi1>
    %107 = vector.broadcast %106 : vector<8x1xi1> to vector<8x128xi1>
    %108 = arith.select %107, %100, %103 : vector<8x128xi1>, vector<8x128xf32>
    %109 = arith.index_cast %c2_i32 : i32 to index
    %c0_45 = arith.constant 0 : index
    %c0_46 = arith.constant 0 : index
    %110 = vector.load %arg5[%109, %c0_45, %c0_46] : memref<4x8x128xf32, #tpu.memory_space<vmem>>, vector<1x8x128xf32>
    %111 = vector.shape_cast %110 : vector<1x8x128xf32> to vector<8x128xf32>
    %112 = vector.shape_cast %108 : vector<8x128xf32> to vector<1x8x128xf32>
    tpu.vector_store %arg5[%109, %c0_45, %c0_46], %112 {strides = array<i32>} : memref<4x8x128xf32, #tpu.memory_space<vmem>>, vector<1x8x128xf32>,
    %c1_i32_47 = arith.constant 1 : i32
    %113 = arith.addi %83, %c1_i32_47 : i32
    %114 = arith.index_cast %c2_i32 : i32 to index
    %115 = arith.index_cast %113 : i32 to index
    %c0_48 = arith.constant 0 : index
    %116 = vector.load %arg5[%114, %115, %c0_48] : memref<4x8x128xf32, #tpu.memory_space<vmem>>, vector<1x1x128xf32>
    %117 = vector.shape_cast %116 : vector<1x1x128xf32> to vector<1x128xf32>
    %118 = vector.shape_cast %1 : vector<1x128xf32> to vector<1x1x128xf32>
    tpu.vector_store %arg5[%114, %115, %c0_48], %118 {strides = array<i32>} : memref<4x8x128xf32, #tpu.memory_space<vmem>>, vector<1x1x128xf32>,
    %c3_i32 = arith.constant 3 : i32
    %c4_i32_49 = arith.constant 4 : i32
    %119 = arith.muli %arg0, %c4_i32_49 : i32
    %120 = arith.addi %119, %c3_i32 : i32
    %121 = arith.index_cast %120 : i32 to index
    %122 = memref.load %arg1[%121] : memref<8xi32, #tpu.memory_space<smem>>
    %123 = arith.index_cast %c3_i32 : i32 to index
    %c0_50 = arith.constant 0 : index
    %c0_51 = arith.constant 0 : index
    %124 = vector.load %arg2[%123, %c0_50, %c0_51] : memref<4x1x128xf32, #tpu.memory_space<vmem>>, vector<1x1x128xf32>
    %125 = vector.shape_cast %124 : vector<1x1x128xf32> to vector<1x128xf32>
    %126 = arith.index_cast %c3_i32 : i32 to index
    %c1_52 = arith.constant 1 : index
    %c0_53 = arith.constant 0 : index
    %127 = vector.load %arg6[%126, %c1_52, %c0_53] : memref<4x9x128xf32, #tpu.memory_space<vmem>>, vector<1x1x128xf32>
    %128 = vector.shape_cast %127 : vector<1x1x128xf32> to vector<1x128xf32>
    %129 = vector.shape_cast %125 : vector<1x128xf32> to vector<1x1x128xf32>
    tpu.vector_store %arg6[%126, %c1_52, %c0_53], %129 {strides = array<i32>} : memref<4x9x128xf32, #tpu.memory_space<vmem>>, vector<1x1x128xf32>,
    %130 = arith.index_cast %c3_i32 : i32 to index
    %c0_54 = arith.constant 0 : index
    %c0_55 = arith.constant 0 : index
    %131 = vector.load %arg4[%130, %c0_54, %c0_55] : memref<4x6x128xf32, #tpu.memory_space<vmem>>, vector<1x6x128xf32>
    %132 = vector.shape_cast %131 : vector<1x6x128xf32> to vector<6x128xf32>
    %133 = arith.index_cast %c3_i32 : i32 to index
    %c2_56 = arith.constant 2 : index
    %c0_57 = arith.constant 0 : index
    %134 = vector.load %arg6[%133, %c2_56, %c0_57] : memref<4x9x128xf32, #tpu.memory_space<vmem>>, vector<1x6x128xf32>
    %135 = vector.shape_cast %134 : vector<1x6x128xf32> to vector<6x128xf32>
    %136 = vector.shape_cast %132 : vector<6x128xf32> to vector<1x6x128xf32>
    tpu.vector_store %arg6[%133, %c2_56, %c0_57], %136 {strides = array<i32>} : memref<4x9x128xf32, #tpu.memory_space<vmem>>, vector<1x6x128xf32>,
    %137 = arith.index_cast %c3_i32 : i32 to index
    %c1_58 = arith.constant 1 : index
    %c0_59 = arith.constant 0 : index
    %138 = vector.load %arg6[%137, %c1_58, %c0_59] : memref<4x9x128xf32, #tpu.memory_space<vmem>>, vector<1x8x128xf32>
    %139 = vector.shape_cast %138 : vector<1x8x128xf32> to vector<8x128xf32>
    %140 = arith.index_cast %c3_i32 : i32 to index
    %c0_60 = arith.constant 0 : index
    %c0_61 = arith.constant 0 : index
    %141 = vector.load %arg6[%140, %c0_60, %c0_61] : memref<4x9x128xf32, #tpu.memory_space<vmem>>, vector<1x8x128xf32>
    %142 = vector.shape_cast %141 : vector<1x8x128xf32> to vector<8x128xf32>
    %143 = vector.broadcast %122 : i32 to vector<8x1xi32>
    %144 = arith.cmpi sle, %0, %143 : vector<8x1xi32>
    %145 = vector.shape_cast %144 : vector<8x1xi1> to vector<8x1xi1>
    %146 = vector.broadcast %145 : vector<8x1xi1> to vector<8x128xi1>
    %147 = arith.select %146, %139, %142 : vector<8x128xi1>, vector<8x128xf32>
    %148 = arith.index_cast %c3_i32 : i32 to index
    %c0_62 = arith.constant 0 : index
    %c0_63 = arith.constant 0 : index
    %149 = vector.load %arg5[%148, %c0_62, %c0_63] : memref<4x8x128xf32, #tpu.memory_space<vmem>>, vector<1x8x128xf32>
    %150 = vector.shape_cast %149 : vector<1x8x128xf32> to vector<8x128xf32>
    %151 = vector.shape_cast %147 : vector<8x128xf32> to vector<1x8x128xf32>
    tpu.vector_store %arg5[%148, %c0_62, %c0_63], %151 {strides = array<i32>} : memref<4x8x128xf32, #tpu.memory_space<vmem>>, vector<1x8x128xf32>,
    %c1_i32_64 = arith.constant 1 : i32
    %152 = arith.addi %122, %c1_i32_64 : i32
    %153 = arith.index_cast %c3_i32 : i32 to index
    %154 = arith.index_cast %152 : i32 to index
    %c0_65 = arith.constant 0 : index
    %155 = vector.load %arg5[%153, %154, %c0_65] : memref<4x8x128xf32, #tpu.memory_space<vmem>>, vector<1x1x128xf32>
    %156 = vector.shape_cast %155 : vector<1x1x128xf32> to vector<1x128xf32>
    %157 = vector.shape_cast %1 : vector<1x128xf32> to vector<1x1x128xf32>
    tpu.vector_store %arg5[%153, %154, %c0_65], %157 {strides = array<i32>} : memref<4x8x128xf32, #tpu.memory_space<vmem>>, vector<1x1x128xf32>,
    %c4_i32_66 = arith.constant 4 : i32
    return
  }
  func.func @transform_0(%arg0: i32, %arg1: memref<8xi32, #tpu.memory_space<smem>>) -> (i32, i32, i32) {
    %c0_i32 = arith.constant 0 : i32
    %c0_i32_0 = arith.constant 0 : i32
    %c0_i32_1 = arith.constant 0 : i32
    return %arg0, %c0_i32, %c0_i32_0 : i32, i32, i32
  }
  func.func @transform_1(%arg0: i32, %arg1: memref<8xi32, #tpu.memory_space<smem>>) -> (i32, i32) {
    %c0_i32 = arith.constant 0 : i32
    %c0_i32_0 = arith.constant 0 : i32
    %c0_i32_1 = arith.constant 0 : i32
    return %c0_i32, %c0_i32_0 : i32, i32
  }
  func.func @transform_2(%arg0: i32, %arg1: memref<8xi32, #tpu.memory_space<smem>>) -> (i32, i32, i32) {
    %c0_i32 = arith.constant 0 : i32
    %c0_i32_0 = arith.constant 0 : i32
    %c0_i32_1 = arith.constant 0 : i32
    return %arg0, %c0_i32, %c0_i32_0 : i32, i32, i32
  }
  func.func @transform_3(%arg0: i32, %arg1: memref<8xi32, #tpu.memory_space<smem>>) -> (i32, i32, i32) {
    %c0_i32 = arith.constant 0 : i32
    %c0_i32_0 = arith.constant 0 : i32
    %c0_i32_1 = arith.constant 0 : i32
    return %arg0, %c0_i32, %c0_i32_0 : i32, i32, i32
  }
}

</mosaic_0001>

<bundles_post_ra>
// kernel: tpu_custom_call.1
= control target key start
LH: loop header
LB: loop body
LE: loop exit
PB: predicated region body
PF: predicated region fallthrough
CT: control target
= control target key end

     0   :  { %s710_s0 = inlined_call_operand.vmem [shape: s32[8], index: 0, kind: input, shape index: {}]   ;;  %s711_s1 = inlined_call_operand.vmem [shape: f32[8,1,128], index: 1, kind: input, shape index: {}]   ;;  %s712_s2 = inlined_call_operand.vmem [shape: f32[1,128], index: 2, kind: input, shape index: {}]   ;;  %s713_s3 = inlined_call_operand.vmem [shape: f32[8,6,128], index: 3, kind: input, shape index: {}]   ;;  %s714_s4 = inlined_call_operand.hbm [shape: f32[8,8,128], index: 4, kind: output, shape index: {}]  }
   0x1   :  { %s9_s17 = sshll.u32 %s710_s0, 4  ;;  %s10_s17 = int_to_ptr.vmem [resolvable:$true] %s9_s17 }
   0x2   :  { %s447_s18 = scalar_lea.vmem %s10_s17, 16  ;;  %p452_p1 = scmp.lt.s32.totalorder %s10_s17, %s10_s17 }
   0x3   :  { %p448_p0 = scmp.ne.s32.totalorder %s10_s17, %s447_s18  ;;  %p453_p2 = scmp.lt.s32.totalorder %s447_s18, %s447_s18 }
   0x5   :  { %p454_p3 = por %p453_p2, %p452_p1 }
   0x7   :  { %p455_p4 = pnand %p454_p3, %p448_p0 }
   0x9   :  { %458 = shalt.err (!%p455_p4)  }
   0xa   :  { %s525_s19 = smov [#allocation4]  }
   0xb   :  { %12 = dma.vmem_to_smem %s10_s17, 16, %s525_s19, [#allocation3] }
   0xc   :  { %503 = dma.done.wait [#allocation3], 16 }
   0xd   :  { %504 = vsyncadd [#allocation3], 4294967280 }
   0xe   :  { %14 = sfence }
   0xf   :  { %15 = vsyncpa [#allocation6], 0 }
  0x10   :  { %17 = vsyncpa [#allocation6 + $0x1], 0  ;;  %s557_s20 = smov 0   ;;  %s559_s21 = smov 0  }
  0x11   :  { %s561_s0 = smov 0   ;;  %s563_s22 = smov 0  }
  0x12 LB: > { %s578_s23 = sadd.s32 4294967295, %s523_s22   ;;  %s377_s24 = sadd.s32 4294967294, %s523_s22   ;;  %s523_s22 = sphi %s563_s22, %s722_s22   ;;  %s519_s0 = sphi %s561_s0, %s721_s0   ;;  %s515_s21 = sphi %s559_s21, %s720_s21   ;;  %s511_s20 = sphi %s557_s20, %s719_s20  }
  0x13   : > { %s582_s25 = sadd.s32 1, %s523_s22   ;;  %s103_s26 = sadd.s32 1, %s519_s0 }
  0x14   : > { %s100_s27 = ssub.s32 %s523_s22, %s582_s25  ;;  %p113_p5 = scmp.ne.s32.totalorder %s519_s0, %s515_s21 }
  0x15   : > { %p101_p6 = scmp.eq.s32.totalorder %s100_s27, 0  ;;  %p114_p7 = scmp.eq.s32.totalorder %s578_s23, 1 }
  0x16   : > { %p119_p8 = scmp.ne.s32.totalorder %s515_s21, %s511_s20  ;;  %p120_p9 = scmp.eq.s32.totalorder %s377_s24, 1 }
  0x17   : > { %s593_s28 = scalar_select %p101_p6, %s519_s0, %s103_s26  }
  0x18   : > { %p595_p10 = por %p114_p7, %p113_p5  ;;  %p599_p11 = por %p120_p9, %p119_p8 }
  0x19   : > { %p380_p12 = scmp.ge.s32.totalorder %s523_s22, 1  ;;  %p158_p13 = scmp.lt.s32.totalorder %s523_s22, 3 }
  0x1b   : > { %p159_p0 = pnand %p380_p12, %p158_p13 }
  0x1c   : > { %s606_s5 = sshll.u32 (!%p159_p0), %s578_s23, 2  ;;  %s183_s8 = sand.u32 (!%p159_p0), 1, %s515_s21   ;;  %v198_v0 = vlaneseq (!%p159_p0)  ;;  %v200_v11 = vld [vmem:[%s712_s2] sm:$0x1] (!%p159_p0) }
  0x1d   : > { %162 = sbr.rel (%p159_p0) target bundleno = 74 (0x4a), region = 32  ;;  %p187_p1 = scmp.lt.s32.totalorder (!%p159_p0), %s606_s5, 7 }
  0x1e   : > { %s610_s6 = sld [smem:[#allocation4 + %s606_s5]] (!%p159_p0)  ;;  %s381_s16 = sshll.u32 (!%p159_p0), %s183_s8, 5  ;;  %v199_v9 = vshrl.u32 (!%p159_p0), %v198_v0, 7 }
  0x1f   : > { %s218_s17 = sadd.s32 (!%p159_p0), 1, %s606_s5  ;;  %s240_s19 = sadd.s32 (!%p159_p0), 2, %s606_s5 }
  0x20   : > { %s623_s18 = sld [smem:[#allocation4 + %s218_s17]] (!%p159_p0)  ;;  %s262_s26 = sadd.s32 (!%p159_p0), 3, %s606_s5 }
  0x21   : > { %s627_s24 = sld [smem:[#allocation4 + %s240_s19]] (!%p159_p0)  ;;  %s635_s10 = scalar_lea.vmem (!%p159_p0), [#allocation5], %s381_s16 }
  0x22   : > { %s630_s27 = sld [smem:[#allocation4 + %s262_s26]] (!%p159_p0)  ;;  %s526_s19 = smov (!%p159_p0), [#allocation5]  }
  0x24   : > { %s188_s7 = scalar_select %p187_p1, %s606_s5, 7  ;;  %v209_v10 = vstv %s610_s6 }
  0x25   : > { %vm210_vm0 = vcmp.le.s32.totalorder %v199_v9, %v209_v10  ;;  %s298_s5 = sshll.u32 %s635_s10, 4  ;;  %s656_s5 = int_to_ptr.vmem [resolvable:$true] %s298_s5 }
  0x26   : > { %s189_s11 = scalar_lea.vmem %s711_s1, %s188_s7  ;;  %s384_s12 = sshll.u32 %s188_s7, 3  ;;  %v229_v15 = vstv %s623_s18 }
  0x27   : > { %v203_v1 = vld [vmem:[%s189_s11] sm:$0x1]  ;;  %s195_s15 = scalar_lea.vmem %s713_s3, %s384_s12  ;;  %v387_v2 = vld [vmem:[%s189_s11 + $0x1] sm:$0x1]  ;;  %v391_v3 = vld [vmem:[%s189_s11 + $0x2] sm:$0x1]  ;;  %vm640_vm1 = vcmp.le.s32.totalorder %v199_v9, %v229_v15  ;;  %v251_v21 = vstv %s627_s24  ;;  %s338_s13 = scalar_lea.vmem %s635_s10, %s627_s24 [#allocation5] }
  0x28   : > { %204 = vst [vmem:[#allocation2 + $0x1] sm:$0x1] %v203_v1  ;;  %v205_v4 = vld [vmem:[%s195_s15] sm:$0x3f]  ;;  %223 = vst [vmem:[#allocation2 + $0x11] sm:$0x1] %v387_v2  ;;  %vm252_vm2 = vcmp.le.s32.totalorder %v199_v9, %v251_v21  ;;  %v273_v25 = vstv %s630_s27  ;;  %s340_s14 = scalar_lea.vmem %s635_s10, %s630_s27 [#allocation5] }
  0x29   : > { %v388_v5 = vld [vmem:[%s195_s15 + $0x8] sm:$0x3f]  ;;  %245 = vst [vmem:[#allocation2 + $0x21] sm:$0x1] %v391_v3  ;;  %v392_v6 = vld [vmem:[%s195_s15 + $0x10] sm:$0x3f]  ;;  %vm274_vm3 = vcmp.le.s32.totalorder %v199_v9, %v273_v25 }
  0x2a   : > { %206 = vst [vmem:[#allocation2 + $0x2] sm:$0x3f] %v205_v4  ;;  %226 = vst [vmem:[#allocation2 + $0x12] sm:$0x3f] %v388_v5  ;;  %v395_v7 = vld [vmem:[%s189_s11 + $0x3] sm:$0x1]  ;;  %s334_s11 = scalar_lea.vmem %s635_s10, %s610_s6 [#allocation5]  ;;  %s336_s6 = scalar_lea.vmem %s635_s10, %s623_s18 [#allocation5] }
  0x2b   : > { %248 = vst [vmem:[#allocation2 + $0x22] sm:$0x3f] %v392_v6  ;;  %v396_v8 = vld [vmem:[%s195_s15 + $0x18] sm:$0x3f]  ;;  %267 = vst [vmem:[#allocation2 + $0x31] sm:$0x1] %v395_v7 }
  0x2c   : > { %270 = vst [vmem:[#allocation2 + $0x32] sm:$0x3f] %v396_v8  ;;  %s404_s12 = sshll.u32 %s578_s23, 9  ;;  %s669_s23 = scalar_lea.sflag [#allocation6], %s183_s8 }
  0x2d   : > { %s664_s17 = scalar_lea.hbm %s714_s4, %s404_s12  ;;  %s459_s18 = scalar_lea.vmem %s656_s5, 512 }
  0x2e   : > { %p460_p2 = scmp.ne.s32.totalorder %s656_s5, %s459_s18  ;;  %s463_s24 = sshll.u32 %s526_s19, 4  ;;  %s464_s24 = int_to_ptr.vmem [resolvable:$false] %s463_s24 }
  0x2f   : > { %s465_s26 = scalar_lea.vmem %s464_s24, 1024  ;;  %p466_p5 = scmp.lt.s32.totalorder %s656_s5, %s464_s24 }
  0x30   : > { %p461_p3 = pnand %p460_p2, %p595_p10  ;;  %p467_p6 = scmp.lt.s32.totalorder %s465_s26, %s459_s18 }
  0x31   : > { %v207_v12 = vld [vmem:[#allocation2 + $0x1] sm:$0xff]  ;;  %v227_v14 = vld [vmem:[#allocation2 + $0x11] sm:$0xff] }
  0x32   : > { %v208_v13 = vld [vmem:[#allocation2] sm:$0xff]  ;;  %v228_v17 = vld [vmem:[#allocation2 + $0x10] sm:$0xff]  ;;  %p462_p4 = pneg %p461_p3  ;;  %p468_p7 = por %p467_p6, %p466_p5 }
  0x33   : > { %v213_v16 = vsel %vm210_vm0, %v207_v12, %v208_v13  ;;  %v249_v19 = vld [vmem:[#allocation2 + $0x21] sm:$0xff]  ;;  %v233_v22 = vsel %vm640_vm1, %v227_v14, %v228_v17  ;;  %v271_v23 = vld [vmem:[#allocation2 + $0x31] sm:$0xff] }
  0x34   : > { %v250_v20 = vld [vmem:[#allocation2 + $0x20] sm:$0xff]  ;;  %214 = vst [vmem:[%s635_s10] sm:$0xff] %v213_v16  ;;  %v272_v24 = vld [vmem:[#allocation2 + $0x30] sm:$0xff]  ;;  %p469_p8 = pnand %p468_p7, %p462_p4 }
  0x35   : > { %386 = vst [vmem:[%s334_s11 + $0x1] sm:$0x1] %v200_v11  ;;  %v255_v26 = vsel %vm252_vm2, %v249_v19, %v250_v20  ;;  %v277_v27 = vsel %vm274_vm3, %v271_v23, %v272_v24 }
  0x36   : > { %389 = vst [vmem:[%s635_s10 + $0x8] sm:$0xff] %v233_v22 }
  0x37   : > { %390 = vst [vmem:[%s336_s6 + $0x9] sm:$0x1] %v200_v11 }
  0x38   : > { %393 = vst [vmem:[%s635_s10 + $0x10] sm:$0xff] %v255_v26 }
  0x39   : > { %394 = vst [vmem:[%s338_s13 + $0x11] sm:$0x1] %v200_v11 }
  0x3a   : > { %397 = vst [vmem:[%s635_s10 + $0x18] sm:$0xff] %v277_v27 }
  0x3b   : > { %398 = vst [vmem:[%s340_s14 + $0x19] sm:$0x1] %v200_v11 }
  0x3c   : > { %472 = shalt.err (!%p469_p8)
}
  0x3d   : > { %s473_s8 = scalar_lea.hbm %s664_s17, 512  ;;  %s477_s9 = scalar_lea.hbm %s714_s4, 1024 }
  0x3e   : > { %p474_p9 = scmp.ne.s32.totalorder %s664_s17, %s473_s8  ;;  %p478_p0 = scmp.lt.u32.totalorder %s664_s17, %s714_s4 }
  0x3f   : > { %p479_p1 = scmp.lt.u32.totalorder %s477_s9, %s473_s8  ;;  %p481_p3 = scmp.lt.u32.totalorder %s473_s8, %s664_s17 }
  0x40   : > { %p475_p12 = pnand %p474_p9, %p595_p10 }
  0x41   : > { %p480_p2 = por %p479_p1, %p478_p0 }
  0x42   : > { %p476_p13 = pneg %p475_p12 }
  0x43   : > { %p482_p4 = por %p481_p3, %p480_p2 }
  0x45   : > { %p483_p5 = pnand %p482_p4, %p476_p13 }
  0x47   : > { %486 = shalt.err (!%p483_p5)
}
  0x48   : > { %s527_s6 = smov 128   ;;  %s528_s12 = smov 8  }
  0x49   : > { %405 = dma.vmem_to_hbm [thread:$0]  (%p595_p10), %s656_s5, 512, %s664_s17, %s669_s23, %s527_s6, %s527_s6, %s528_s12  }
  0x4a PF: > { %p411_p6 = scmp.ge.s32.totalorder %s523_s22, 2  ;;  %s313_s13 = sand.u32 1, %s511_s20  }
  0x4b   : > { %s314_s14 = scalar_lea.sflag [#allocation6], %s313_s13 }
  0x4c   : > { %p408_p7 = pnand %p411_p6, %p599_p11 }
  0x4e   : > { %506 = dma.done.wait (!%p408_p7), %s314_s14, 512  }
  0x4f   : > { %508 = vsyncadd (!%p408_p7), %s314_s14, 4294966784  ;;  %p20_p8 = scmp.ge.s32.totalorder %s582_s25, 4   ;;  %s719_s20 = smov %s515_s21 }
  0x50   : > { %s720_s21 = smov %s519_s0  ;;  %s721_s0 = smov %s593_s28 }
  0x51   : > { %s722_s22 = smov %s582_s25  ;;  %22 = sbr.rel (!%p20_p8) target bundleno = 18 (0x12), region = 86 }
  0x58   :  { %319 = vsyncpa [#allocation6], 1 }
  0x59   :  { %321 = vsyncpa [#allocation6 + $0x1], 1 }

</bundles_post_ra>
